<compile_context>
chip_gen: v7x
topology: tpu7x:2x2x1
jax: 0.10.0
libtpu: 0.0.40
codegen_flags: <defaults>
</compile_context>

<pallas_src>
import functools

import jax
import jax.numpy as jnp
from jax import lax
from jax.experimental import pallas as pl
from jax.experimental.pallas import tpu as pltpu


_VMEM_LIMIT = 32 * 1024 * 1024  # explicit; safe on v5e/v6e/v7x, >> our ~2-4 MB of tiles


def _round_up(x, m):
    return ((x + m - 1) // m) * m


def _pad2d(x, rows, cols):
    r, c = x.shape
    if r == rows and c == cols:
        return x
    return jnp.pad(x, ((0, rows - r), (0, cols - c)))


# ----------------------------------------------------------------------------
# Fused conv-GEMM kernel: bf16 x bf16 -> f32 accumulate, optional LeakyReLU
# epilogue, and per-channel (sum, sum_sq) partial statistics for BatchNorm
# emitted per (M-block, N-block) at the last K step.
# ----------------------------------------------------------------------------
def _matmul_stats_kernel(a_ref, b_ref, o_ref, sum_ref, sq_ref, acc_ref,
                         *, apply_leaky, slope):
    k = pl.program_id(2)

    @pl.when(k == 0)
    def _():
        acc_ref[...] = jnp.zeros_like(acc_ref)

    acc_ref[...] += jnp.dot(a_ref[...], b_ref[...],
                            preferred_element_type=jnp.float32)

    @pl.when(k == pl.num_programs(2) - 1)
    def _():
        r = acc_ref[...]
        # Per-channel partial stats of the *pre-activation* conv output
        # (exactly what BatchNorm needs). Row reductions ride the XLU slot.
        sum_ref[...] = jnp.sum(r, axis=0, keepdims=True)
        sq_ref[...] = jnp.sum(r * r, axis=0, keepdims=True)
        if apply_leaky:
            r = jnp.where(r > 0, r, slope * r)
        o_ref[...] = r.astype(o_ref.dtype)


def pallas_conv_gemm(a, b, *, apply_leaky=False, slope=0.2,
                     out_dtype=jnp.bfloat16, tm=256, tn=256, tk=512):
    """(M, K) @ (K, N) with bf16 operands, f32 accumulation.

    Returns (out[M, N] in out_dtype,
             partial_sums[num_m_blocks, N] f32,
             partial_sumsq[num_m_blocks, N] f32)."""
    M, K = a.shape
    K2, N = b.shape
    assert K == K2

    # Adaptive tiles: clamp to the (16/128-aligned) problem so small GEMMs
    # (e.g. the final 2x16384x7 projection) do not get padded to 128x128.
    tm = min(tm, _round_up(M, 16))
    tn = min(tn, _round_up(N, 128))
    tk = min(tk, _round_up(K, 128))
    Mp, Kp, Np = _round_up(M, tm), _round_up(K, tk), _round_up(N, tn)

    a_p = _pad2d(a.astype(jnp.bfloat16), Mp, Kp)   # astype is a no-op when a is bf16
    b_p = _pad2d(b.astype(jnp.bfloat16), Kp, Np)
    nmb = Mp // tm

    out, psum, psq = pl.pallas_call(
        functools.partial(_matmul_stats_kernel,
                          apply_leaky=apply_leaky, slope=slope),
        out_shape=(jax.ShapeDtypeStruct((Mp, Np), out_dtype),
                   jax.ShapeDtypeStruct((nmb, 1, Np), jnp.float32),
                   jax.ShapeDtypeStruct((nmb, 1, Np), jnp.float32)),
        grid_spec=pltpu.PrefetchScalarGridSpec(
            num_scalar_prefetch=0,
            grid=(nmb, Np // tn, Kp // tk),
            in_specs=[pl.BlockSpec((tm, tk), lambda i, j, k: (i, k)),
                      pl.BlockSpec((tk, tn), lambda i, j, k: (k, j))],
            out_specs=[pl.BlockSpec((tm, tn), lambda i, j, k: (i, j)),
                       pl.BlockSpec((None, 1, tn), lambda i, j, k: (i, 0, j)),
                       pl.BlockSpec((None, 1, tn), lambda i, j, k: (i, 0, j))],
            scratch_shapes=[pltpu.VMEM((tm, tn), jnp.float32)],
        ),
        compiler_params=pltpu.CompilerParams(
            dimension_semantics=("parallel", "parallel", "arbitrary"),
            vmem_limit_bytes=_VMEM_LIMIT),
    )(a_p, b_p)

    return out[:M, :N], psum[:, 0, :N], psq[:, 0, :N]


# ----------------------------------------------------------------------------
# Fused scale/bias + LeakyReLU (BatchNorm normalize) kernel.
# ----------------------------------------------------------------------------
def _scale_bias_leaky_kernel(x_ref, scale_ref, bias_ref, o_ref, *, slope):
    y = x_ref[...].astype(jnp.float32) * scale_ref[...] + bias_ref[...]
    o_ref[...] = jnp.where(y > 0, y, slope * y).astype(o_ref.dtype)


def pallas_scale_bias_leaky(x, scale, bias, *, slope=0.2, tm=1024):
    """x: (M, C) bf16; scale/bias: (1, C) f32. Returns bf16 (M, C)."""
    M, C = x.shape
    tm = min(tm, _round_up(M, 16))
    Mp = _round_up(M, tm)
    x_p = x if Mp == M else jnp.pad(x, ((0, Mp - M), (0, 0)))
    out = pl.pallas_call(
        functools.partial(_scale_bias_leaky_kernel, slope=slope),
        out_shape=jax.ShapeDtypeStruct((Mp, C), jnp.bfloat16),
        grid_spec=pltpu.PrefetchScalarGridSpec(
            num_scalar_prefetch=0,
            grid=(Mp // tm,),
            in_specs=[pl.BlockSpec((tm, C), lambda i: (i, 0)),
                      pl.BlockSpec((1, C), lambda i: (0, 0)),
                      pl.BlockSpec((1, C), lambda i: (0, 0))],
            out_specs=pl.BlockSpec((tm, C), lambda i: (i, 0)),
        ),
        compiler_params=pltpu.CompilerParams(
            dimension_semantics=("parallel",),
            vmem_limit_bytes=_VMEM_LIMIT),
    )(x_p, scale, bias)
    return out if Mp == M else out[:M]


# ----------------------------------------------------------------------------
# Conv3d = im2col (JAX layout glue, bf16) + fused Pallas GEMM
# ----------------------------------------------------------------------------
def _im2col_3d(x, ksize, stride, pad):
    """x: (N, D, H, W, C) bf16 -> patches (N*Do*Ho*Wo, KD*KH*KW*C), out dims."""
    N, D, H, W, C = x.shape
    KD, KH, KW = ksize
    SD, SH, SW = stride
    PD, PH, PW = pad
    x = jnp.pad(x, ((0, 0), (PD, PD), (PH, PH), (PW, PW), (0, 0)))
    Dp, Hp, Wp = D + 2 * PD, H + 2 * PH, W + 2 * PW
    Do = (Dp - KD) // SD + 1
    Ho = (Hp - KH) // SH + 1
    Wo = (Wp - KW) // SW + 1
    pieces = []
    for kd in range(KD):
        for kh in range(KH):
            for kw in range(KW):
                sl = lax.slice(
                    x,
                    (0, kd, kh, kw, 0),
                    (N, kd + (Do - 1) * SD + 1, kh + (Ho - 1) * SH + 1,
                     kw + (Wo - 1) * SW + 1, C),
                    (1, SD, SH, SW, 1))
                pieces.append(sl)
    patches = jnp.concatenate(pieces, axis=-1)          # (N, Do, Ho, Wo, K*C)
    return patches.reshape(N * Do * Ho * Wo, KD * KH * KW * C), (N, Do, Ho, Wo)


def conv3d_pallas(x, w, stride, pad, *, apply_leaky=False, slope=0.2,
                  out_dtype=jnp.bfloat16, tk=512):
    """x: (N, D, H, W, C_in) bf16; w: PyTorch layout (C_out, C_in, KD, KH, KW) f32.

    Returns (y NDHWC, per-M-block channel sums, channel sum-of-squares, count)."""
    Cout, Cin, KD, KH, KW = w.shape
    patches, (N, Do, Ho, Wo) = _im2col_3d(x, (KD, KH, KW), stride, pad)
    w_mat = jnp.transpose(w, (2, 3, 4, 1, 0)).reshape(
        KD * KH * KW * Cin, Cout).astype(jnp.bfloat16)
    y, psum, psq = pallas_conv_gemm(patches, w_mat, apply_leaky=apply_leaky,
                                    slope=slope, out_dtype=out_dtype, tk=tk)
    count = jnp.float32(N * Do * Ho * Wo)
    return y.reshape(N, Do, Ho, Wo, Cout), psum, psq, count


def batchnorm3d_leaky_pallas(x, psum, psq, count, gamma, beta,
                             *, eps=1e-5, slope=0.2):
    """x: (N, D, H, W, C) bf16 conv output; psum/psq: (nmb, C) f32 partials from
    the fused GEMM epilogue. Training-mode BatchNorm3d (batch stats, biased
    variance — as PyTorch) + LeakyReLU."""
    N, D, H, W, C = x.shape
    s = jnp.sum(psum, axis=0)
    sq = jnp.sum(psq, axis=0)
    mean = s / count
    var = sq / count - mean * mean        # biased variance, as PyTorch BN training
    scale = gamma * lax.rsqrt(var + eps)
    bias = beta - mean * scale
    xf = x.reshape(N * D * H * W, C)
    y = pallas_scale_bias_leaky(xf, scale.reshape(1, C), bias.reshape(1, C),
                                slope=slope)
    return y.reshape(N, D, H, W, C)


# ----------------------------------------------------------------------------
# CategoricalVideoDiscriminator
# ----------------------------------------------------------------------------
def init_params(key, n_channels, n_output_total, ndf=64):
    ks = jax.random.split(key, 5)

    def conv_w(k, cout, cin, kd, kh, kw):
        fan_in = cin * kd * kh * kw
        std = (2.0 / fan_in) ** 0.5
        return std * jax.random.normal(k, (cout, cin, kd, kh, kw), jnp.float32)

    params = {
        "w1": conv_w(ks[0], ndf, n_channels, 3, 4, 4),
        "w2": conv_w(ks[1], ndf * 2, ndf, 3, 4, 4),
        "w3": conv_w(ks[2], ndf * 4, ndf * 2, 3, 4, 4),
        "w4": conv_w(ks[3], ndf * 8, ndf * 4, 3, 4, 4),
        "w5": conv_w(ks[4], n_output_total, ndf * 8, 2, 4, 4),
        "g2": jnp.ones((ndf * 2,), jnp.float32), "b2": jnp.zeros((ndf * 2,), jnp.float32),
        "g3": jnp.ones((ndf * 4,), jnp.float32), "b3": jnp.zeros((ndf * 4,), jnp.float32),
        "g4": jnp.ones((ndf * 8,), jnp.float32), "b4": jnp.zeros((ndf * 8,), jnp.float32),
    }
    return params


def categorical_video_discriminator(x_ncdhw, params, dim_categorical):
    """Forward pass. x_ncdhw: (N, C, D, H, W), PyTorch NCDHW convention.
    Returns (labels, categ) like the PyTorch module."""
    # use_noise=False in this config -> Noise layers are identity.
    x = jnp.transpose(x_ncdhw, (0, 2, 3, 4, 1)).astype(jnp.bfloat16)  # NDHWC bf16

    # conv1 + LeakyReLU(0.2) fused in the GEMM epilogue
    h, _, _, _ = conv3d_pallas(x, params["w1"], (1, 2, 2), (0, 1, 1),
                               apply_leaky=True, slope=0.2)
    # conv2 + BN (stats fused into the GEMM epilogue) + LeakyReLU
    h, ps, pq, cnt = conv3d_pallas(h, params["w2"], (1, 2, 2), (0, 1, 1))
    h = batchnorm3d_leaky_pallas(h, ps, pq, cnt, params["g2"], params["b2"])
    # conv3 + BN + LeakyReLU
    h, ps, pq, cnt = conv3d_pallas(h, params["w3"], (1, 2, 2), (0, 1, 1))
    h = batchnorm3d_leaky_pallas(h, ps, pq, cnt, params["g3"], params["b3"])
    # conv4 + BN + LeakyReLU
    h, ps, pq, cnt = conv3d_pallas(h, params["w4"], (1, 2, 2), (0, 1, 1))
    h = batchnorm3d_leaky_pallas(h, ps, pq, cnt, params["g4"], params["b4"])
    # final conv, no activation; tall-skinny GEMM with small adaptive tiles
    h, _, _, _ = conv3d_pallas(h, params["w5"], (1, 1, 1), (0, 0, 0),
                               out_dtype=jnp.float32, tk=2048)  # (N,1,1,1,Ctot)

    # .squeeze() -> (N, Ctot) for N > 1, then split into (labels, categorical)
    h = jnp.squeeze(h, axis=(1, 2, 3))
    n_total = h.shape[1]
    labels = h[:, : n_total - dim_categorical]
    categ = h[:, n_total - dim_categorical:]
    return labels, categ


if __name__ == "__main__":
    key = jax.random.PRNGKey(0)
    k_in, k_par = jax.random.split(key)

    # Small-but-valid shapes: final conv (2,4,4) after four stride-(1,2,2)
    # depth-3 convs needs D >= 10 and H = W >= 64.
    N, C, D, H, W = 2, 3, 10, 64, 64
    n_output_neurons, dim_categorical = 1, 6

    x = jax.random.normal(k_in, (N, C, D, H, W), jnp.float32)
    params = init_params(k_par, C, n_output_neurons + dim_categorical)

    labels, categ = categorical_video_discriminator(x, params, dim_categorical)
    labels = jax.block_until_ready(labels)
    categ = jax.block_until_ready(categ)

    assert labels.shape == (N, n_output_neurons), labels.shape
    assert categ.shape == (N, dim_categorical), categ.shape
    assert bool(jnp.all(jnp.isfinite(labels))) and bool(jnp.all(jnp.isfinite(categ)))
    print("KERNEL_OK")
</pallas_src>

<mosaic_0001>
module attributes {stable_mosaic.version = 11 : i64} {
  func.func @_matmul_stats_kernel(%arg0: i32, %arg1: i32, %arg2: i32, %arg3: memref<256x256xbf16, #tpu.memory_space<vmem>>, %arg4: memref<256x128xbf16, #tpu.memory_space<vmem>>, %arg5: memref<256x128xbf16, #tpu.memory_space<vmem>>, %arg6: memref<1x1x128xf32, #tpu.memory_space<vmem>>, %arg7: memref<1x1x128xf32, #tpu.memory_space<vmem>>, %arg8: memref<256x128xf32, #tpu.memory_space<vmem>>) attributes {dimension_semantics = [#tpu.dimension_semantics<parallel>, #tpu.dimension_semantics<parallel>, #tpu.dimension_semantics<arbitrary>], iteration_bounds = array<i64: 64, 1, 1>, scalar_prefetch = 0 : i64, scratch_operands = 1 : i64, tpu.core_type = #tpu.core_type<tc>, window_params = [{transform_indices = @transform_0, window_bounds = array<i64: 256, 256>}, {transform_indices = @transform_1, window_bounds = array<i64: 256, 128>}, {transform_indices = @transform_2, window_bounds = array<i64: 256, 128>}, {transform_indices = @transform_3, window_bounds = array<i64: 1, 1, 128>}, {transform_indices = @transform_4, window_bounds = array<i64: 1, 1, 128>}]} {
    %c0_i32 = arith.constant 0 : i32
    %0 = arith.cmpi eq, %arg2, %c0_i32 : i32
    %1 = arith.extui %0 : i1 to i32
    %c0_i32_0 = arith.constant 0 : i32
    %2 = arith.cmpi ne, %1, %c0_i32_0 : i32
    scf.if %2 {
      %cst_10 = arith.constant 0.000000e+00 : f32
      %12 = vector.broadcast %cst_10 : f32 to vector<256x128xf32>
      %c0_11 = arith.constant 0 : index
      %c0_12 = arith.constant 0 : index
      %13 = vector.load %arg8[%c0_11, %c0_12] : memref<256x128xf32, #tpu.memory_space<vmem>>, vector<256x128xf32>
      tpu.vector_store %arg8[%c0_11, %c0_12], %12 {strides = array<i32>} : memref<256x128xf32, #tpu.memory_space<vmem>>, vector<256x128xf32>,
    } else {
    }
    %c0 = arith.constant 0 : index
    %c0_1 = arith.constant 0 : index
    %3 = vector.load %arg8[%c0, %c0_1] : memref<256x128xf32, #tpu.memory_space<vmem>>, vector<256x128xf32>
    %c0_2 = arith.constant 0 : index
    %c0_3 = arith.constant 0 : index
    %4 = vector.load %arg3[%c0_2, %c0_3] : memref<256x256xbf16, #tpu.memory_space<vmem>>, vector<256x256xbf16>
    %c0_4 = arith.constant 0 : index
    %c0_5 = arith.constant 0 : index
    %5 = vector.load %arg4[%c0_4, %c0_5] : memref<256x128xbf16, #tpu.memory_space<vmem>>, vector<256x128xbf16>
    %cst = arith.constant dense<0.000000e+00> : vector<256x128xf32>
    %6 = tpu.matmul %4, %5, %cst {dimension_numbers = #tpu.dot_dimension_numbers<[1], [0], [0], [1], [0, 0, 1, 1], [], []>} : vector<256x256xbf16>, vector<256x128xbf16>, vector<256x128xf32> -> vector<256x128xf32>
    %7 = arith.addf %3, %6 : vector<256x128xf32>
    %c0_6 = arith.constant 0 : index
    %c0_7 = arith.constant 0 : index
    %8 = vector.load %arg8[%c0_6, %c0_7] : memref<256x128xf32, #tpu.memory_space<vmem>>, vector<256x128xf32>
    tpu.vector_store %arg8[%c0_6, %c0_7], %7 {strides = array<i32>} : memref<256x128xf32, #tpu.memory_space<vmem>>, vector<256x128xf32>,
    %c0_i32_8 = arith.constant 0 : i32
    %9 = arith.cmpi eq, %arg2, %c0_i32_8 : i32
    %10 = arith.extui %9 : i1 to i32
    %c0_i32_9 = arith.constant 0 : i32
    %11 = arith.cmpi ne, %10, %c0_i32_9 : i32
    scf.if %11 {
      %c0_10 = arith.constant 0 : index
      %c0_11 = arith.constant 0 : index
      %12 = vector.load %arg8[%c0_10, %c0_11] : memref<256x128xf32, #tpu.memory_space<vmem>>, vector<256x128xf32>
      %cst_12 = arith.constant dense<0.000000e+00> : vector<128xf32>
      %13 = vector.multi_reduction <add>, %12, %cst_12 [0] : vector<256x128xf32> to vector<128xf32>
      %14 = vector.shape_cast %13 : vector<128xf32> to vector<1x128xf32>
      %c0_13 = arith.constant 0 : index
      %c0_14 = arith.constant 0 : index
      %c0_15 = arith.constant 0 : index
      %15 = vector.load %arg6[%c0_13, %c0_14, %c0_15] : memref<1x1x128xf32, #tpu.memory_space<vmem>>, vector<1x1x128xf32>
      %16 = vector.shape_cast %15 : vector<1x1x128xf32> to vector<1x128xf32>
      %17 = vector.shape_cast %14 : vector<1x128xf32> to vector<1x1x128xf32>
      tpu.vector_store %arg6[%c0_13, %c0_14, %c0_15], %17 {strides = array<i32>} : memref<1x1x128xf32, #tpu.memory_space<vmem>>, vector<1x1x128xf32>,
      %18 = arith.mulf %12, %12 : vector<256x128xf32>
      %cst_16 = arith.constant dense<0.000000e+00> : vector<128xf32>
      %19 = vector.multi_reduction <add>, %18, %cst_16 [0] : vector<256x128xf32> to vector<128xf32>
      %20 = vector.shape_cast %19 : vector<128xf32> to vector<1x128xf32>
      %c0_17 = arith.constant 0 : index
      %c0_18 = arith.constant 0 : index
      %c0_19 = arith.constant 0 : index
      %21 = vector.load %arg7[%c0_17, %c0_18, %c0_19] : memref<1x1x128xf32, #tpu.memory_space<vmem>>, vector<1x1x128xf32>
      %22 = vector.shape_cast %21 : vector<1x1x128xf32> to vector<1x128xf32>
      %23 = vector.shape_cast %20 : vector<1x128xf32> to vector<1x1x128xf32>
      tpu.vector_store %arg7[%c0_17, %c0_18, %c0_19], %23 {strides = array<i32>} : memref<1x1x128xf32, #tpu.memory_space<vmem>>, vector<1x1x128xf32>,
      %cst_20 = arith.constant 0.000000e+00 : f32
      %24 = vector.broadcast %cst_20 : f32 to vector<256x128xf32>
      %25 = arith.cmpf ogt, %12, %24 : vector<256x128xf32>
      %cst_21 = arith.constant 2.000000e-01 : f32
      %26 = vector.broadcast %cst_21 : f32 to vector<256x128xf32>
      %27 = arith.mulf %26, %12 : vector<256x128xf32>
      %28 = arith.select %25, %12, %27 : vector<256x128xi1>, vector<256x128xf32>
      %29 = arith.truncf %28 : vector<256x128xf32> to vector<256x128xbf16>
      %c0_22 = arith.constant 0 : index
      %c0_23 = arith.constant 0 : index
      %30 = vector.load %arg5[%c0_22, %c0_23] : memref<256x128xbf16, #tpu.memory_space<vmem>>, vector<256x128xbf16>
      tpu.vector_store %arg5[%c0_22, %c0_23], %29 {strides = array<i32>} : memref<256x128xbf16, #tpu.memory_space<vmem>>, vector<256x128xbf16>,
    } else {
    }
    return
  }
  func.func @transform_0(%arg0: i32, %arg1: i32, %arg2: i32) -> (i32, i32) {
    %c0_i32 = arith.constant 0 : i32
    return %arg0, %arg2 : i32, i32
  }
  func.func @transform_1(%arg0: i32, %arg1: i32, %arg2: i32) -> (i32, i32) {
    %c0_i32 = arith.constant 0 : i32
    return %arg2, %arg1 : i32, i32
  }
  func.func @transform_2(%arg0: i32, %arg1: i32, %arg2: i32) -> (i32, i32) {
    %c0_i32 = arith.constant 0 : i32
    return %arg0, %arg1 : i32, i32
  }
  func.func @transform_3(%arg0: i32, %arg1: i32, %arg2: i32) -> (i32, i32, i32) {
    %c0_i32 = arith.constant 0 : i32
    %c0_i32_0 = arith.constant 0 : i32
    return %arg0, %c0_i32, %arg1 : i32, i32, i32
  }
  func.func @transform_4(%arg0: i32, %arg1: i32, %arg2: i32) -> (i32, i32, i32) {
    %c0_i32 = arith.constant 0 : i32
    %c0_i32_0 = arith.constant 0 : i32
    return %arg0, %c0_i32, %arg1 : i32, i32, i32
  }
}

</mosaic_0001>

<bundles_post_ra>
// kernel: tpu_custom_call.1
= control target key start
LH: loop header
LB: loop body
LE: loop exit
PB: predicated region body
PF: predicated region fallthrough
CT: control target
= control target key end

     0   :  { %10 = vsyncpa [#allocation4], 0  ;;  %s2734_s0 = inlined_call_operand.hbm [shape: bf16[16384,256], index: 0, kind: input, shape index: {}]   ;;  %s2735_s1 = inlined_call_operand.hbm [shape: bf16[256,128], index: 1, kind: input, shape index: {}]   ;;  %s2736_s2 = inlined_call_operand.hbm [shape: bf16[16384,128], index: 2, kind: output, shape index: {0}]   ;;  %s2737_s3 = inlined_call_operand.hbm [shape: f32[64,1,128], index: 3, kind: output, shape index: {1}]   ;;  %s2738_s4 = inlined_call_operand.hbm [shape: f32[64,1,128], index: 4, kind: output, shape index: {2}]  }
   0x1   :  { %12 = vsyncpa [#allocation4 + $0x1], 0 }
   0x2   :  { %13 = vsyncpa [#allocation7], 0 }
   0x3   :  { %14 = vsyncpa [#allocation5], 0 }
   0x4   :  { %16 = vsyncpa [#allocation5 + $0x1], 0 }
   0x5   :  { %17 = vsyncpa [#allocation10], 0 }
   0x6   :  { %19 = vsyncpa [#allocation10 + $0x1], 0  ;;  %s2267_s15 = smov 0   ;;  %s2269_s16 = smov 0  }
   0x7   :  { %s2271_s17 = smov 0   ;;  %s2273_s18 = smov 0  }
   0x8   :  { %s2275_s19 = smov 0   ;;  %s2277_s20 = smov 0  }
   0x9 LB: > { %s2298_s21 = sadd.s32 4294967295, %s2229_s20   ;;  %s1515_s22 = sadd.s32 4294967294, %s2229_s20   ;;  %s2229_s20 = sphi %s2277_s20, %s25_s20   ;;  %s2225_s19 = sphi %s2275_s19, %s2759_s19   ;;  %s2221_s18 = sphi %s2273_s18, %s2758_s18   ;;  %s2217_s17 = sphi %s2271_s17, %s2757_s17   ;;  %s2213_s16 = sphi %s2269_s16, %s2756_s16   ;;  %s2209_s15 = sphi %s2267_s15, %s2755_s15  }
   0xa   : > { %p66_p0 = scmp.ne.s32.totalorder %s2213_s16, %s2209_s15  ;;  %p2739_p1 = scmp.eq.s32.totalorder %s2298_s21, 0 }
   0xb   : > { %p126_p3 = scmp.eq.s32.totalorder %s1515_s22, 63  ;;  %p1516_p5 = scmp.ge.s32.totalorder %s2229_s20, 1 }
   0xc   : > { %p2309_p4 = por %p2739_p1, %p66_p0  ;;  %p189_p7 = scmp.lt.s32.totalorder %s2229_s20, 65 }
   0xd   : > { %p2314_p6 = por %p126_p3, %p66_p0  ;;  %s2231_s26 = smov [#allocation6]  }
   0xe   : > { %s2742_s23 = scalar_select %p2309_p4, 1, 0 }
   0xf   : > { %s2743_s24 = scalar_select %p2314_p6, 1, 0 }
  0x10   : > { %p2319_p8 = pnand %p1516_p5, %p189_p7  ;;  %s205_s27 = sshll.u32 %s2231_s26, 4  ;;  %s206_s27 = int_to_ptr.vmem [resolvable:$true] %s205_s27 }
  0x11   : > { %s44_s29 = sadd.s32 1, %s2225_s19  ;;  %s2025_s6 = scalar_lea.hbm %s2735_s1, 2048 }
  0x12   : > { %s2744_s25 = scalar_select %p2319_p8, 1, 0 }
  0x13   : > { %p1884_p9 = pneg %p2319_p8  ;;  %p2026_p11 = scmp.ne.s32.totalorder %s2735_s1, %s2025_s6 }
  0x14   : > { %p2032_p3 = scmp.lt.u32.totalorder %s2025_s6, %s2735_s1 }
  0x15   : > { %p2327_p10 = pnand %p1884_p9, %p2739_p1 }
  0x17   : > { %p2027_p12 = pneg %p2327_p10 }
  0x19   : > { %p2028_p13 = pnand %p2027_p12, %p2026_p11 }
  0x1b   : > { %p2029_p0 = pneg %p2028_p13 }
  0x1d   : > { %p2034_p5 = pnand %p2032_p3, %p2029_p0 }
  0x1f   : > { %2037 = shalt.err (!%p2034_p5)
}
  0x20   : > { %s2038_s11 = scalar_lea.vmem %s206_s27, 2048  ;;  %p2046_p2 = scmp.lt.s32.totalorder %s206_s27, %s206_s27 }
  0x21   : > { %p2039_p7 = scmp.ne.s32.totalorder %s206_s27, %s2038_s11  ;;  %p2047_p6 = scmp.lt.s32.totalorder %s2038_s11, %s2038_s11 }
  0x23   : > { %p2041_p9 = pnand %p2039_p7, %p2027_p12  ;;  %p2048_p4 = por %p2047_p6, %p2046_p2 }
  0x25   : > { %p2042_p1 = pneg %p2041_p9 }
  0x27   : > { %p2049_p8 = pnand %p2048_p4, %p2042_p1 }
  0x29   : > { %2052 = shalt.err (!%p2049_p8)
}
  0x2a   : > { %s2232_s12 = smov 64   ;;  %s2233_s13 = smov 4  }
  0x2b   : > { %1887 = dma.hbm_to_vmem [thread:$0]  (!%p2327_p10), %s2735_s1, 2048, %s206_s27, [#allocation7], %s2232_s12, %s2232_s12, %s2233_s13  }
  0x2c   : > { %p46_p1 = scmp.ge.s32.totalorder %s44_s29, 64  ;;  %s53_s30 = sadd.s32 1, %s2217_s17 }
  0x2d   : > { %p60_p2 = scmp.ne.s32.totalorder %s2217_s17, %s2213_s16  ;;  %p61_p4 = scmp.eq.s32.totalorder %s2229_s20, 0 }
  0x2e   : > { %s2761_s29 = smov (%p46_p1, %s44_s29), 0  ;;  %p2747_p8 = scmp.eq.s32.totalorder %s2298_s21, 63 }
  0x2f   : > { %p2354_p6 = por %p61_p4, %p60_p2  ;;  %s48_s28 = ssub.s32 %s2225_s19, %s2761_s29 }
  0x30   : > { %p2360_p11 = por %p2747_p8, %p60_p2  ;;  %p1903_p12 = scmp.lt.s32.totalorder %s2229_s20, 64 }
  0x31   : > { %p51_p10 = scmp.eq.s32.totalorder %s48_s28, 0  ;;  %s219_s27 = sand.u32 1, %s2217_s17  }
  0x32   : > { %s1519_s7 = sshll.u32 %s219_s27, 8  ;;  %s1615_s9 = sshll.u32 %s2225_s19, 12 }
  0x33   : > { %s2369_s8 = scalar_select %p51_p10, %s2217_s17, %s53_s30  }
  0x34   : > { %s2375_s12 = scalar_lea.hbm %s2734_s0, %s1615_s9  ;;  %s223_s13 = scalar_lea.vmem [#allocation3], %s1519_s7 }
  0x35   : > { %s233_s14 = sshll.u32 %s223_s13, 4  ;;  %p2381_p13 = pnand %p1903_p12, %p2354_p6  ;;  %s2377_s14 = int_to_ptr.vmem [resolvable:$true] %s233_s14 }
  0x36   : > { %s2385_s30 = scalar_lea.sflag [#allocation4], %s219_s27  ;;  %s2053_s28 = scalar_lea.hbm %s2375_s12, 4096 }
  0x37   : > { %p2054_p0 = scmp.ne.s32.totalorder %s2375_s12, %s2053_s28  ;;  %p2055_p3 = pneg %p2381_p13 }
  0x38   : > { %s2058_s5 = scalar_lea.hbm %s2734_s0, 262144  ;;  %p2059_p9 = scmp.lt.u32.totalorder %s2375_s12, %s2734_s0 }
  0x39   : > { %p2056_p5 = pnand %p2055_p3, %p2054_p0  ;;  %p2060_p1 = scmp.lt.u32.totalorder %s2058_s5, %s2053_s28 }
  0x3a   : > { %p2062_p4 = scmp.lt.u32.totalorder %s2053_s28, %s2375_s12 }
  0x3b   : > { %p2057_p7 = pneg %p2056_p5  ;;  %p2061_p2 = por %p2060_p1, %p2059_p9 }
  0x3d   : > { %p2063_p6 = por %p2062_p4, %p2061_p2 }
  0x3f   : > { %p2064_p8 = pnand %p2063_p6, %p2057_p7 }
  0x41   : > { %2067 = shalt.err (!%p2064_p8)
}
  0x42   : > { %s2068_s27 = scalar_lea.vmem %s2377_s14, 4096  ;;  %s2234_s13 = smov [#allocation3]  }
  0x43   : > { %p2069_p12 = scmp.ne.s32.totalorder %s2377_s14, %s2068_s27  ;;  %s2073_s7 = sshll.u32 %s2234_s13, 4  ;;  %s2074_s7 = int_to_ptr.vmem [resolvable:$false] %s2073_s7 }
  0x44   : > { %s2075_s9 = scalar_lea.vmem %s2074_s7, 8192  ;;  %p2076_p5 = scmp.lt.s32.totalorder %s2377_s14, %s2074_s7 }
  0x45   : > { %p2071_p10 = pnand %p2069_p12, %p2055_p3  ;;  %p2077_p9 = scmp.lt.s32.totalorder %s2075_s9, %s2068_s27 }
  0x47   : > { %p2072_p0 = pneg %p2071_p10  ;;  %p2078_p1 = por %p2077_p9, %p2076_p5 }
  0x49   : > { %p2079_p2 = pnand %p2078_p1, %p2072_p0 }
  0x4b   : > { %2082 = shalt.err (!%p2079_p2)
}
  0x4c   : > { %s2235_s28 = smov 128   ;;  %s2236_s5 = smov 8  }
  0x4d   : > { %1891 = dma.hbm_to_vmem [thread:$0]  (!%p2381_p13), %s2375_s12, 4096, %s2377_s14, %s2385_s30, %s2235_s28, %s2235_s28, %s2236_s5  }
  0x4e   : > { %p2750_p3 = scmp.ne.s32.totalorder %s2744_s25, 0 }
  0x4f   : > { %s2416_s10 = sand.u32 (!%p2750_p3), 1, %s2213_s16   ;;  %p2751_p7 = scmp.ne.s32.totalorder (!%p2750_p3), %s2742_s23, 0 }
  0x50   : > { %245 = sbr.rel (%p2750_p3) target bundleno = 490 (0x1ea), region = 28  ;;  %s1524_s11 = sshll.u32 (!%p2750_p3), %s2416_s10, 8 }
  0x51   : > { %s248_s27 = scalar_lea.sflag (!%p2750_p3), [#allocation4], %s2416_s10  ;;  %s2420_s13 = scalar_lea.vmem (!%p2750_p3), [#allocation3], %s1524_s11 }
  0x57   : > { %2192 = dma.done.wait (%p2751_p7), %s248_s27, 4096  }
  0x58   : > { %2194 = vsyncadd (%p2751_p7), %s248_s27, 4294963200  ;;  %p2752_p13 = scmp.eq.s32.totalorder %s2298_s21, 0 }
  0x5a   : > { %2196 = dma.done.wait (%p2752_p13), [#allocation7], 2048   ;;  %p2753_p4 = pmov %p2752_p13 }
  0x5b   : > { %v1961_v0 = vld [vmem:[#allocation6 + $0x40] sm:$0xff]   ;;  %v1963_v2 = vld [vmem:[#allocation6 + $0x48] sm:$0xff]   ;;  %v1965_v4 = vld [vmem:[#allocation6 + $0x50] sm:$0xff]   ;;  %s1526_s23 = sshll.u32 %s2416_s10, 7  ;;  %s1648_s12 = sshll.u32 %s2221_s18, 11 }
  0x5c   : > { %2198 = vsyncadd (%p2753_p4), [#allocation7], 4294965248  ;;  %v1962_v1 = vld [vmem:[#allocation6] sm:$0xff]   ;;  %1744 = vmatprep.subr.bf16.mxu0 %v1961_v0  ;;  %1856 = vmatprep.subr.bf16.mxu1 %v1961_v0  ;;  %v1964_v3 = vld [vmem:[#allocation6 + $0x8] sm:$0xff]   ;;  %s2475_s25 = scalar_lea.vmem [#allocation8], %s1526_s23  ;;  %s2567_s7 = scalar_lea.hbm %s2736_s2, %s1648_s12 }
  0x5d   : > { %1745 = vmatpush3.bf16.msra.mxu0 %v1962_v1  ;;  %1864 = vmatpush3.bf16.msra.mxu1 %v1962_v1  ;;  %v1966_v5 = vld [vmem:[#allocation6 + $0x10] sm:$0xff]   ;;  %v1967_v6 = vld [vmem:[#allocation6 + $0x58] sm:$0xff]   ;;  %v1969_v8 = vld [vmem:[#allocation6 + $0x60] sm:$0xff]   ;;  %s1328_s14 = sshll.u32 %s2475_s25, 4  ;;  %s1306_s9 = scalar_lea.sflag [#allocation5], %s2416_s10  ;;  %s2569_s14 = int_to_ptr.vmem [resolvable:$true] %s1328_s14 }
  0x5e   : > { %1746 = vmatprep.subr.bf16.mxu0 %v1963_v2  ;;  %1857 = vmatprep.subr.bf16.mxu1 %v1963_v2  ;;  %v1968_v7 = vld [vmem:[#allocation6 + $0x18] sm:$0xff]   ;;  %v1970_v9 = vld [vmem:[#allocation6 + $0x20] sm:$0xff]   ;;  %v1971_v10 = vld [vmem:[#allocation6 + $0x68] sm:$0xff]   ;;  %s2083_s28 = scalar_lea.vmem %s2569_s14, 2048  ;;  %s2237_s5 = smov [#allocation8]  }
  0x5f   : > { %v1979_v11 = vld [vmem:[%s2420_s13 + $0x4] ss:$8 sps:$4 sm:$0xff]   ;;  %v1973_v13 = vld [vmem:[#allocation6 + $0x70] sm:$0xff]   ;;  %v1975_v16 = vld [vmem:[#allocation6 + $0x78] sm:$0xff]   ;;  %p2084_p6 = scmp.ne.s32.totalorder %s2569_s14, %s2083_s28  ;;  %s2087_s11 = sshll.u32 %s2237_s5, 4  ;;  %s2088_s11 = int_to_ptr.vmem [resolvable:$false] %s2087_s11 }
  0x60   : > { %v1972_v12 = vld [vmem:[#allocation6 + $0x28] sm:$0xff]   ;;  %713 = vmatprep.mubr.bf16.mxu0 %v1979_v11  ;;  %v1974_v15 = vld [vmem:[#allocation6 + $0x30] sm:$0xff]   ;;  %v1976_v17 = vld [vmem:[#allocation6 + $0x38] sm:$0xff]   ;;  %s2089_s27 = scalar_lea.vmem %s2088_s11, 4096  ;;  %p2090_p10 = scmp.lt.s32.totalorder %s2569_s14, %s2088_s11 }
  0x61   : > { %1747 = vmatpush3.bf16.msra.mxu0 %v1964_v3  ;;  %1865 = vmatpush3.bf16.msra.mxu1 %v1964_v3  ;;  %v1991_v14 = vld [vmem:[%s2420_s13 + $0x84] ss:$8 sps:$4 sm:$0xff]   ;;  %v1977_v18 = vld [vmem:[%s2420_s13] ss:$8 sps:$4 sm:$0xff]   ;;  %v1980_v19 = vld [vmem:[%s2420_s13 + $0x14] ss:$8 sps:$4 sm:$0xff]   ;;  %p2085_p8 = pnand %p2084_p6, %p2360_p11  ;;  %p2091_p0 = scmp.lt.s32.totalorder %s2089_s27, %s2083_s28 }
  0x62   : > { %1748 = vmatprep.subr.bf16.mxu0 %v1965_v4  ;;  %1858 = vmatprep.subr.bf16.mxu1 %v1965_v4  ;;  %v1989_v20 = vld [vmem:[%s2420_s13 + $0x80] ss:$8 sps:$4 sm:$0xff]   ;;  %v1995_v21 = vld [vmem:[%s2420_s13 + $0x94] ss:$8 sps:$4 sm:$0xff]   ;;  %v1982_v22 = vld [vmem:[%s2420_s13 + $0x10] ss:$8 sps:$4 sm:$0xff]  }
  0x63   : > { %777 = vmatprep.mubr.bf16.mxu1 %v1991_v14  ;;  %v1983_v23 = vld [vmem:[%s2420_s13 + $0x24] ss:$8 sps:$4 sm:$0xff]   ;;  %v1997_v24 = vld [vmem:[%s2420_s13 + $0x90] ss:$8 sps:$4 sm:$0xff]   ;;  %v1985_v26 = vld [vmem:[%s2420_s13 + $0x20] ss:$8 sps:$4 sm:$0xff]   ;;  %p2086_p12 = pneg %p2085_p8  ;;  %p2092_p5 = por %p2091_p0, %p2090_p10 }
  0x64   : > { %v2001_v25 = vld [vmem:[%s2420_s13 + $0xa4] ss:$8 sps:$4 sm:$0xff]   ;;  %v1986_v27 = vld [vmem:[%s2420_s13 + $0x34] ss:$8 sps:$4 sm:$0xff]   ;;  %v2003_v28 = vld [vmem:[%s2420_s13 + $0xa0] ss:$8 sps:$4 sm:$0xff]  }
  0x65   : > { %1749 = vmatpush3.bf16.msra.mxu0 %v1966_v5  ;;  %1866 = vmatpush3.bf16.msra.mxu1 %v1966_v5  ;;  %v2007_v29 = vld [vmem:[%s2420_s13 + $0xb4] ss:$8 sps:$4 sm:$0xff]   ;;  %v1988_v30 = vld [vmem:[%s2420_s13 + $0x30] ss:$8 sps:$4 sm:$0xff]   ;;  %v1992_v31 = vld [vmem:[%s2420_s13 + $0x44] ss:$8 sps:$4 sm:$0xff]   ;;  %p2093_p9 = pnand %p2092_p5, %p2086_p12 }
  0x66   : > { %1750 = vmatprep.subr.bf16.mxu0 %v1967_v6  ;;  %1859 = vmatprep.subr.bf16.mxu1 %v1967_v6  ;;  %v2009_v32 = vld [vmem:[%s2420_s13 + $0xb0] ss:$8 sps:$4 sm:$0xff]   ;;  %v2013_v33 = vld [vmem:[%s2420_s13 + $0xc4] ss:$8 sps:$4 sm:$0xff]   ;;  %v1994_v34 = vld [vmem:[%s2420_s13 + $0x40] ss:$8 sps:$4 sm:$0xff]  }
  0x67   : > { %v1998_v35 = vld [vmem:[%s2420_s13 + $0x54] ss:$8 sps:$4 sm:$0xff]   ;;  %v2015_v36 = vld [vmem:[%s2420_s13 + $0xc0] ss:$8 sps:$4 sm:$0xff]   ;;  %v2000_v38 = vld [vmem:[%s2420_s13 + $0x50] ss:$8 sps:$4 sm:$0xff]  }
  0x68   : > { %v2016_v37 = vld [vmem:[%s2420_s13 + $0xd4] ss:$8 sps:$4 sm:$0xff]   ;;  %v2004_v39 = vld [vmem:[%s2420_s13 + $0x64] ss:$8 sps:$4 sm:$0xff]   ;;  %v2018_v40 = vld [vmem:[%s2420_s13 + $0xd0] ss:$8 sps:$4 sm:$0xff]  }
  0x69   : > { %1751 = vmatpush3.bf16.msra.mxu0 %v1968_v7  ;;  %1867 = vmatpush3.bf16.msra.mxu1 %v1968_v7  ;;  %v2019_v41 = vld [vmem:[%s2420_s13 + $0xe4] ss:$8 sps:$4 sm:$0xff]   ;;  %v2006_v42 = vld [vmem:[%s2420_s13 + $0x60] ss:$8 sps:$4 sm:$0xff]   ;;  %v2010_v43 = vld [vmem:[%s2420_s13 + $0x74] ss:$8 sps:$4 sm:$0xff]  }
  0x6a   : > { %1752 = vmatprep.subr.bf16.mxu0 %v1969_v8  ;;  %1860 = vmatprep.subr.bf16.mxu1 %v1969_v8  ;;  %v2021_v44 = vld [vmem:[%s2420_s13 + $0xe0] ss:$8 sps:$4 sm:$0xff]   ;;  %v2022_v45 = vld [vmem:[%s2420_s13 + $0xf4] ss:$8 sps:$4 sm:$0xff]   ;;  %v2012_v46 = vld [vmem:[%s2420_s13 + $0x70] ss:$8 sps:$4 sm:$0xff]  }
  0x6b   : > { %v2024_v47 = vld [vmem:[%s2420_s13 + $0xf0] ss:$8 sps:$4 sm:$0xff]  }
  0x6d   : > { %1753 = vmatpush3.bf16.msra.mxu0 %v1970_v9  ;;  %1868 = vmatpush3.bf16.msra.mxu1 %v1970_v9 }
  0x6e   : > { %1754 = vmatprep.subr.bf16.mxu0 %v1971_v10  ;;  %1861 = vmatprep.subr.bf16.mxu1 %v1971_v10 }
  0x71   : > { %1755 = vmatpush3.bf16.msra.mxu0 %v1972_v12  ;;  %1869 = vmatpush3.bf16.msra.mxu1 %v1972_v12 }
  0x72   : > { %1756 = vmatprep.subr.bf16.mxu0 %v1973_v13  ;;  %1862 = vmatprep.subr.bf16.mxu1 %v1973_v13 }
  0x75   : > { %1757 = vmatpush3.bf16.msra.mxu0 %v1974_v15  ;;  %1870 = vmatpush3.bf16.msra.mxu1 %v1974_v15 }
  0x76   : > { %1758 = vmatprep.subr.bf16.mxu0 %v1975_v16  ;;  %1863 = vmatprep.subr.bf16.mxu1 %v1975_v16 }
  0x79   : > { %1759 = vmatpush3.bf16.msra.mxu0 %v1976_v17  ;;  %1871 = vmatpush3.bf16.msra.mxu1 %v1976_v17 }
  0x7c   : > { %714 = vmatmul.mubr.bf16.vlgmr.msra.gmra.mrb[0].mxu0 %v1977_v18  ;;  %778 = vmatmul.mubr.bf16.vlgmr.msra.gmra.mrb[0].mxu1 %v1989_v20 }
  0x7d   : > { %721 = vmatprep.mubr.bf16.mxu0 %v1980_v19  ;;  %785 = vmatprep.mubr.bf16.mxu1 %v1995_v21 }
  0x84   : > { %722 = vmatmul.mubr.bf16.gmra.mrb[4].mxu0 %v1982_v22  ;;  %786 = vmatmul.mubr.bf16.gmra.mrb[4].mxu1 %v1997_v24 }
  0x85   : > { %729 = vmatprep.mubr.bf16.mxu0 %v1983_v23  ;;  %793 = vmatprep.mubr.bf16.mxu1 %v2001_v25 }
  0x8c   : > { %730 = vmatmul.mubr.bf16.gmra.mrb[8].mxu0 %v1985_v26  ;;  %794 = vmatmul.mubr.bf16.gmra.mrb[8].mxu1 %v2003_v28 }
  0x8d   : > { %737 = vmatprep.mubr.bf16.mxu0 %v1986_v27  ;;  %801 = vmatprep.mubr.bf16.mxu1 %v2007_v29 }
  0x94   : > { %738 = vmatmul.mubr.bf16.gmra.mrb[12].mxu0 %v1988_v30  ;;  %802 = vmatmul.mubr.bf16.gmra.mrb[12].mxu1 %v2009_v32 }
  0x95   : > { %745 = vmatprep.mubr.bf16.mxu0 %v1992_v31  ;;  %809 = vmatprep.mubr.bf16.mxu1 %v2013_v33 }
  0x9c   : > { %746 = vmatmul.mubr.bf16.gmra.mrb[16].mxu0 %v1994_v34  ;;  %810 = vmatmul.mubr.bf16.gmra.mrb[16].mxu1 %v2015_v36 }
  0x9d   : > { %753 = vmatprep.mubr.bf16.mxu0 %v1998_v35  ;;  %817 = vmatprep.mubr.bf16.mxu1 %v2016_v37 }
  0xa4   : > { %754 = vmatmul.mubr.bf16.gmra.mrb[20].mxu0 %v2000_v38  ;;  %818 = vmatmul.mubr.bf16.gmra.mrb[20].mxu1 %v2018_v40 }
  0xa5   : > { %761 = vmatprep.mubr.bf16.mxu0 %v2004_v39  ;;  %825 = vmatprep.mubr.bf16.mxu1 %v2019_v41 }
  0xac   : > { %762 = vmatmul.mubr.bf16.gmra.mrb[24].mxu0 %v2006_v42  ;;  %826 = vmatmul.mubr.bf16.gmra.mrb[24].mxu1 %v2021_v44 }
  0xad   : > { %769 = vmatprep.mubr.bf16.mxu0 %v2010_v43  ;;  %833 = vmatprep.mubr.bf16.mxu1 %v2022_v45 }
  0xb4   : > { %770 = vmatmul.mubr.bf16.gmra.mrb[28].mxu0 %v2012_v46  ;;  %834 = vmatmul.mubr.bf16.gmra.mrb[28].mxu1 %v2024_v47 }
 0x14f   : > { %v1760_v48 = vpop.f32.mrb[0].mxu0  ;;  %v1808_v50 = vpop.f32.mrb[0].mxu1 }
 0x150   : > { %v1761_v49 = vpop.f32.mrb[1].mxu0  ;;  %v1809_v53 = vpop.f32.mrb[1].mxu1 }
 0x151   : > { %v1762_v51 = vadd.f32 %v1761_v49, %v1760_v48  ;;  %v1763_v52 = vpop.f32.mrb[2].mxu0  ;;  %v2462_v55 = vadd.f32 %v1809_v53, %v1808_v50  ;;  %v1811_v56 = vpop.f32.mrb[2].mxu1 }
 0x152   : > { %v1764_v54 = vpop.f32.mrb[3].mxu0  ;;  %v1812_v59 = vpop.f32.mrb[3].mxu1 }
 0x153   : > { %v979_v57 = vmul.f32 %v1762_v51, %v1762_v51  ;;  %v1765_v58 = vadd.f32 %v1764_v54, %v1763_v52  ;;  %v1081_v60 = vmul.f32 0.2, %v1762_v51  ;;  %vm1065_vm0 = vcmp.gt.f32.partialorder %v2462_v55, 0.0 }
 0x154   : > { %v1097_v61 = vmul.f32 0.2, %v2462_v55  ;;  %v2466_v62 = vadd.f32 %v1812_v59, %v1811_v56  ;;  %vm1049_vm1 = vcmp.gt.f32.partialorder %v1762_v51, 0.0 }
 0x155   : > { %v941_v63 = vadd.f32 %v1765_v58, %v1762_v51  ;;  %v980_v0 = vmul.f32 %v1765_v58, %v1765_v58  ;;  %vm1050_vm2 = vcmp.gt.f32.partialorder %v1765_v58, 0.0  ;;  %v1082_v1 = vmul.f32 0.2, %v1765_v58 }
 0x156   : > { %vm1066_vm3 = vcmp.gt.f32.partialorder %v2466_v62, 0.0  ;;  %v1129_v4 = vsel %vm1065_vm0, %v2462_v55, %v1097_v61  ;;  %v1098_v5 = vmul.f32 0.2, %v2466_v62  ;;  %v1113_v6 = vsel %vm1049_vm1, %v1762_v51, %v1081_v60 }
 0x157   : > { %v1011_v2 = vadd.f32 %v980_v0, %v979_v57  ;;  %v1766_v3 = vpop.f32.mrb[4].mxu0  ;;  %v1114_v7 = vsel %vm1050_vm2, %v1765_v58, %v1082_v1  ;;  %v1814_v9 = vpop.f32.mrb[4].mxu1 }
 0x158   : > { %v1767_v8 = vpop.f32.mrb[5].mxu0  ;;  %v1652_v10 = vpack.c.bf16 %v1114_v7, %v1113_v6  ;;  %v1130_v13 = vsel %vm1066_vm3, %v2466_v62, %v1098_v5  ;;  %v1815_v14 = vpop.f32.mrb[5].mxu1 }
 0x159   : > { %v1768_v11 = vadd.f32 %v1767_v8, %v1766_v3  ;;  %v1769_v12 = vpop.f32.mrb[6].mxu0  ;;  %v1692_v16 = vpack.c.bf16 %v1130_v13, %v1129_v4  ;;  %v2473_v17 = vadd.f32 %v1815_v14, %v1814_v9  ;;  %v1817_v18 = vpop.f32.mrb[6].mxu1 }
 0x15a   : > { %v1770_v15 = vpop.f32.mrb[7].mxu0  ;;  %1653 = vst [vmem:[%s2475_s25] sm:$0xff] %v1652_v10   ;;  %v1818_v21 = vpop.f32.mrb[7].mxu1 }
 0x15b   : > { %v942_v19 = vadd.f32 %v1768_v11, %v941_v63  ;;  %v981_v20 = vmul.f32 %v1768_v11, %v1768_v11  ;;  %v1083_v22 = vmul.f32 0.2, %v1768_v11  ;;  %v1771_v23 = vadd.f32 %v1770_v15, %v1769_v12  ;;  %1736 = vst [vmem:[%s2475_s25 + $0x40] sm:$0xff] %v1692_v16  }
 0x15c   : > { %vm1067_vm4 = vcmp.gt.f32.partialorder %v2473_v17, 0.0  ;;  %v1099_v24 = vmul.f32 0.2, %v2473_v17  ;;  %vm1051_vm5 = vcmp.gt.f32.partialorder %v1768_v11, 0.0  ;;  %v2481_v26 = vadd.f32 %v1818_v21, %v1817_v18 }
 0x15d   : > { %v1012_v25 = vadd.f32 %v1011_v2, %v981_v20  ;;  %v943_v27 = vadd.f32 %v1771_v23, %v942_v19  ;;  %v982_v28 = vmul.f32 %v1771_v23, %v1771_v23  ;;  %vm1052_vm6 = vcmp.gt.f32.partialorder %v1771_v23, 0.0 }
 0x15e   : > { %v1084_v29 = vmul.f32 0.2, %v1771_v23  ;;  %v1131_v31 = vsel %vm1067_vm4, %v2473_v17, %v1099_v24  ;;  %vm1068_vm7 = vcmp.gt.f32.partialorder %v2481_v26, 0.0  ;;  %v1100_v32 = vmul.f32 0.2, %v2481_v26 }
 0x15f   : > { %v1772_v30 = vpop.f32.mrb[8].mxu0  ;;  %v1115_v33 = vsel %vm1051_vm5, %v1768_v11, %v1083_v22  ;;  %v1013_v34 = vadd.f32 %v1012_v25, %v982_v28  ;;  %v1820_v37 = vpop.f32.mrb[8].mxu1 }
 0x160   : > { %v1116_v35 = vsel %vm1052_vm6, %v1771_v23, %v1084_v29  ;;  %v1773_v36 = vpop.f32.mrb[9].mxu0  ;;  %v1132_v41 = vsel %vm1068_vm7, %v2481_v26, %v1100_v32  ;;  %v1821_v42 = vpop.f32.mrb[9].mxu1 }
 0x161   : > { %v1657_v38 = vpack.c.bf16 %v1116_v35, %v1115_v33  ;;  %v1774_v39 = vadd.f32 %v1773_v36, %v1772_v30  ;;  %v1775_v40 = vpop.f32.mrb[10].mxu0  ;;  %v1697_v44 = vpack.c.bf16 %v1132_v41, %v1131_v31  ;;  %v2487_v45 = vadd.f32 %v1821_v42, %v1820_v37  ;;  %v1823_v46 = vpop.f32.mrb[10].mxu1 }
 0x162   : > { %v1776_v43 = vpop.f32.mrb[11].mxu0  ;;  %v1824_v49 = vpop.f32.mrb[11].mxu1 }
 0x163   : > { %1729 = vst [vmem:[%s2475_s25 + $0x8] sm:$0xff] %v1657_v38   ;;  %v944_v47 = vadd.f32 %v1774_v39, %v943_v27  ;;  %v983_v48 = vmul.f32 %v1774_v39, %v1774_v39  ;;  %v1085_v50 = vmul.f32 0.2, %v1774_v39  ;;  %v1777_v51 = vadd.f32 %v1776_v43, %v1775_v40  ;;  %1737 = vst [vmem:[%s2475_s25 + $0x48] sm:$0xff] %v1697_v44  }
 0x164   : > { %vm1069_vm8 = vcmp.gt.f32.partialorder %v2487_v45, 0.0  ;;  %v1101_v52 = vmul.f32 0.2, %v2487_v45  ;;  %vm1053_vm9 = vcmp.gt.f32.partialorder %v1774_v39, 0.0  ;;  %v2493_v54 = vadd.f32 %v1824_v49, %v1823_v46 }
 0x165   : > { %v1014_v53 = vadd.f32 %v1013_v34, %v983_v48  ;;  %v945_v56 = vadd.f32 %v1777_v51, %v944_v47  ;;  %v984_v57 = vmul.f32 %v1777_v51, %v1777_v51  ;;  %vm1054_vm10 = vcmp.gt.f32.partialorder %v1777_v51, 0.0 }
 0x166   : > { %v1086_v58 = vmul.f32 0.2, %v1777_v51  ;;  %v1133_v60 = vsel %vm1069_vm8, %v2487_v45, %v1101_v52  ;;  %vm1070_vm11 = vcmp.gt.f32.partialorder %v2493_v54, 0.0  ;;  %v1102_v61 = vmul.f32 0.2, %v2493_v54 }
 0x167   : > { %v1778_v59 = vpop.f32.mrb[12].mxu0  ;;  %v1117_v63 = vsel %vm1053_vm9, %v1774_v39, %v1085_v50  ;;  %v1015_v0 = vadd.f32 %v1014_v53, %v984_v57  ;;  %v1826_v3 = vpop.f32.mrb[12].mxu1 }
 0x168   : > { %v1118_v1 = vsel %vm1054_vm10, %v1777_v51, %v1086_v58  ;;  %v1779_v2 = vpop.f32.mrb[13].mxu0  ;;  %v1134_v7 = vsel %vm1070_vm11, %v2493_v54, %v1102_v61  ;;  %v1827_v8 = vpop.f32.mrb[13].mxu1 }
 0x169   : > { %v1662_v4 = vpack.c.bf16 %v1118_v1, %v1117_v63  ;;  %v1780_v5 = vadd.f32 %v1779_v2, %v1778_v59  ;;  %v1781_v6 = vpop.f32.mrb[14].mxu0  ;;  %v1702_v10 = vpack.c.bf16 %v1134_v7, %v1133_v60  ;;  %v2499_v11 = vadd.f32 %v1827_v8, %v1826_v3  ;;  %v1829_v12 = vpop.f32.mrb[14].mxu1 }
 0x16a   : > { %v1782_v9 = vpop.f32.mrb[15].mxu0  ;;  %v1830_v15 = vpop.f32.mrb[15].mxu1 }
 0x16b   : > { %1730 = vst [vmem:[%s2475_s25 + $0x10] sm:$0xff] %v1662_v4   ;;  %v946_v13 = vadd.f32 %v1780_v5, %v945_v56  ;;  %v985_v14 = vmul.f32 %v1780_v5, %v1780_v5  ;;  %v1087_v16 = vmul.f32 0.2, %v1780_v5  ;;  %v1783_v18 = vadd.f32 %v1782_v9, %v1781_v6  ;;  %1738 = vst [vmem:[%s2475_s25 + $0x50] sm:$0xff] %v1702_v10  }
 0x16c   : > { %vm1071_vm12 = vcmp.gt.f32.partialorder %v2499_v11, 0.0  ;;  %v1103_v19 = vmul.f32 0.2, %v2499_v11  ;;  %vm1055_vm13 = vcmp.gt.f32.partialorder %v1780_v5, 0.0  ;;  %v2505_v21 = vadd.f32 %v1830_v15, %v1829_v12 }
 0x16d   : > { %v1016_v20 = vadd.f32 %v1015_v0, %v985_v14  ;;  %v947_v22 = vadd.f32 %v1783_v18, %v946_v13  ;;  %v986_v23 = vmul.f32 %v1783_v18, %v1783_v18  ;;  %vm1056_vm14 = vcmp.gt.f32.partialorder %v1783_v18, 0.0 }
 0x16e   : > { %v1088_v24 = vmul.f32 0.2, %v1783_v18  ;;  %v1135_v27 = vsel %vm1071_vm12, %v2499_v11, %v1103_v19  ;;  %vm1072_vm15 = vcmp.gt.f32.partialorder %v2505_v21, 0.0  ;;  %v1104_v28 = vmul.f32 0.2, %v2505_v21 }
 0x16f   : > { %v1784_v25 = vpop.f32.mrb[16].mxu0  ;;  %v1119_v29 = vsel %vm1055_vm13, %v1780_v5, %v1087_v16  ;;  %v1017_v30 = vadd.f32 %v1016_v20, %v986_v23  ;;  %v1832_v33 = vpop.f32.mrb[16].mxu1 }
 0x170   : > { %v1120_v31 = vsel %vm1056_vm14, %v1783_v18, %v1088_v24  ;;  %v1785_v32 = vpop.f32.mrb[17].mxu0  ;;  %v1136_v37 = vsel %vm1072_vm15, %v2505_v21, %v1104_v28  ;;  %v1833_v38 = vpop.f32.mrb[17].mxu1 }
 0x171   : > { %v1667_v34 = vpack.c.bf16 %v1120_v31, %v1119_v29  ;;  %v1786_v35 = vadd.f32 %v1785_v32, %v1784_v25  ;;  %v1787_v36 = vpop.f32.mrb[18].mxu0  ;;  %v1707_v40 = vpack.c.bf16 %v1136_v37, %v1135_v27  ;;  %v2511_v41 = vadd.f32 %v1833_v38, %v1832_v33  ;;  %v1835_v42 = vpop.f32.mrb[18].mxu1 }
 0x172   : > { %v1788_v39 = vpop.f32.mrb[19].mxu0  ;;  %v1836_v46 = vpop.f32.mrb[19].mxu1 }
 0x173   : > { %1731 = vst [vmem:[%s2475_s25 + $0x18] sm:$0xff] %v1667_v34   ;;  %v948_v43 = vadd.f32 %v1786_v35, %v947_v22  ;;  %v987_v44 = vmul.f32 %v1786_v35, %v1786_v35  ;;  %v1089_v47 = vmul.f32 0.2, %v1786_v35  ;;  %v1789_v48 = vadd.f32 %v1788_v39, %v1787_v36  ;;  %1739 = vst [vmem:[%s2475_s25 + $0x58] sm:$0xff] %v1707_v40  }
 0x174   : > { %vm1073_vm0 = vcmp.gt.f32.partialorder %v2511_v41, 0.0  ;;  %v1105_v49 = vmul.f32 0.2, %v2511_v41  ;;  %vm1057_vm1 = vcmp.gt.f32.partialorder %v1786_v35, 0.0  ;;  %v2517_v51 = vadd.f32 %v1836_v46, %v1835_v42 }
 0x175   : > { %v1018_v50 = vadd.f32 %v1017_v30, %v987_v44  ;;  %v949_v52 = vadd.f32 %v1789_v48, %v948_v43  ;;  %v988_v53 = vmul.f32 %v1789_v48, %v1789_v48  ;;  %vm1058_vm2 = vcmp.gt.f32.partialorder %v1789_v48, 0.0 }
 0x176   : > { %v1090_v56 = vmul.f32 0.2, %v1789_v48  ;;  %v1137_v58 = vsel %vm1073_vm0, %v2511_v41, %v1105_v49  ;;  %vm1074_vm3 = vcmp.gt.f32.partialorder %v2517_v51, 0.0  ;;  %v1106_v59 = vmul.f32 0.2, %v2517_v51 }
 0x177   : > { %v1790_v57 = vpop.f32.mrb[20].mxu0  ;;  %v1121_v60 = vsel %vm1057_vm1, %v1786_v35, %v1089_v47  ;;  %v1019_v61 = vadd.f32 %v1018_v50, %v988_v53  ;;  %v1838_v1 = vpop.f32.mrb[20].mxu1 }
 0x178   : > { %v1122_v63 = vsel %vm1058_vm2, %v1789_v48, %v1090_v56  ;;  %v1791_v0 = vpop.f32.mrb[21].mxu0  ;;  %v1138_v5 = vsel %vm1074_vm3, %v2517_v51, %v1106_v59  ;;  %v1839_v6 = vpop.f32.mrb[21].mxu1 }
 0x179   : > { %v1672_v2 = vpack.c.bf16 %v1122_v63, %v1121_v60  ;;  %v1792_v3 = vadd.f32 %v1791_v0, %v1790_v57  ;;  %v1793_v4 = vpop.f32.mrb[22].mxu0  ;;  %v1712_v8 = vpack.c.bf16 %v1138_v5, %v1137_v58  ;;  %v2523_v9 = vadd.f32 %v1839_v6, %v1838_v1  ;;  %v1841_v10 = vpop.f32.mrb[22].mxu1 }
 0x17a   : > { %v1794_v7 = vpop.f32.mrb[23].mxu0  ;;  %v1842_v14 = vpop.f32.mrb[23].mxu1 }
 0x17b   : > { %1732 = vst [vmem:[%s2475_s25 + $0x20] sm:$0xff] %v1672_v2   ;;  %v950_v12 = vadd.f32 %v1792_v3, %v949_v52  ;;  %v989_v13 = vmul.f32 %v1792_v3, %v1792_v3  ;;  %v1091_v15 = vmul.f32 0.2, %v1792_v3  ;;  %v1795_v16 = vadd.f32 %v1794_v7, %v1793_v4  ;;  %1740 = vst [vmem:[%s2475_s25 + $0x60] sm:$0xff] %v1712_v8  }
 0x17c   : > { %vm1075_vm4 = vcmp.gt.f32.partialorder %v2523_v9, 0.0  ;;  %v1107_v18 = vmul.f32 0.2, %v2523_v9  ;;  %vm1059_vm5 = vcmp.gt.f32.partialorder %v1792_v3, 0.0  ;;  %v2529_v20 = vadd.f32 %v1842_v14, %v1841_v10 }
 0x17d   : > { %v1020_v19 = vadd.f32 %v1019_v61, %v989_v13  ;;  %v951_v22 = vadd.f32 %v1795_v16, %v950_v12  ;;  %v990_v23 = vmul.f32 %v1795_v16, %v1795_v16  ;;  %vm1060_vm6 = vcmp.gt.f32.partialorder %v1795_v16, 0.0 }
 0x17e   : > { %v1092_v24 = vmul.f32 0.2, %v1795_v16  ;;  %v1139_v27 = vsel %vm1075_vm4, %v2523_v9, %v1107_v18  ;;  %vm1076_vm7 = vcmp.gt.f32.partialorder %v2529_v20, 0.0  ;;  %v1108_v28 = vmul.f32 0.2, %v2529_v20 }
 0x17f   : > { %v1796_v25 = vpop.f32.mrb[24].mxu0  ;;  %v1123_v29 = vsel %vm1059_vm5, %v1792_v3, %v1091_v15  ;;  %v1021_v30 = vadd.f32 %v1020_v19, %v990_v23  ;;  %v1844_v33 = vpop.f32.mrb[24].mxu1 }
 0x180   : > { %v1124_v31 = vsel %vm1060_vm6, %v1795_v16, %v1092_v24  ;;  %v1797_v32 = vpop.f32.mrb[25].mxu0  ;;  %v1140_v37 = vsel %vm1076_vm7, %v2529_v20, %v1108_v28  ;;  %v1845_v38 = vpop.f32.mrb[25].mxu1 }
 0x181   : > { %v1677_v34 = vpack.c.bf16 %v1124_v31, %v1123_v29  ;;  %v1798_v35 = vadd.f32 %v1797_v32, %v1796_v25  ;;  %v1799_v36 = vpop.f32.mrb[26].mxu0  ;;  %v1717_v40 = vpack.c.bf16 %v1140_v37, %v1139_v27  ;;  %v2535_v42 = vadd.f32 %v1845_v38, %v1844_v33  ;;  %v1847_v43 = vpop.f32.mrb[26].mxu1 }
 0x182   : > { %v1800_v39 = vpop.f32.mrb[27].mxu0  ;;  %v1848_v47 = vpop.f32.mrb[27].mxu1 }
 0x183   : > { %1733 = vst [vmem:[%s2475_s25 + $0x28] sm:$0xff] %v1677_v34   ;;  %v952_v44 = vadd.f32 %v1798_v35, %v951_v22  ;;  %v991_v46 = vmul.f32 %v1798_v35, %v1798_v35  ;;  %v1093_v48 = vmul.f32 0.2, %v1798_v35  ;;  %v1801_v49 = vadd.f32 %v1800_v39, %v1799_v36  ;;  %1741 = vst [vmem:[%s2475_s25 + $0x68] sm:$0xff] %v1717_v40  }
 0x184   : > { %vm1077_vm8 = vcmp.gt.f32.partialorder %v2535_v42, 0.0  ;;  %v1109_v50 = vmul.f32 0.2, %v2535_v42  ;;  %vm1061_vm9 = vcmp.gt.f32.partialorder %v1798_v35, 0.0  ;;  %v2541_v53 = vadd.f32 %v1848_v47, %v1847_v43 }
 0x185   : > { %v1022_v52 = vadd.f32 %v1021_v30, %v991_v46  ;;  %v953_v56 = vadd.f32 %v1801_v49, %v952_v44  ;;  %v992_v57 = vmul.f32 %v1801_v49, %v1801_v49  ;;  %vm1062_vm10 = vcmp.gt.f32.partialorder %v1801_v49, 0.0 }
 0x186   : > { %v1094_v58 = vmul.f32 0.2, %v1801_v49  ;;  %v1141_v60 = vsel %vm1077_vm8, %v2535_v42, %v1109_v50  ;;  %vm1078_vm11 = vcmp.gt.f32.partialorder %v2541_v53, 0.0  ;;  %v1110_v61 = vmul.f32 0.2, %v2541_v53 }
 0x187   : > { %v1802_v59 = vpop.f32.mrb[28].mxu0  ;;  %v1125_v63 = vsel %vm1061_vm9, %v1798_v35, %v1093_v48  ;;  %v1023_v0 = vadd.f32 %v1022_v52, %v992_v57  ;;  %v1850_v3 = vpop.f32.mrb[28].mxu1  ;;  %v995_v30 = vmul.f32 %v2462_v55, %v2462_v55  ;;  %v996_v39 = vmul.f32 %v2466_v62, %v2466_v62 }
 0x188   : > { %v1126_v1 = vsel %vm1062_vm10, %v1801_v49, %v1094_v58  ;;  %v1803_v2 = vpop.f32.mrb[29].mxu0  ;;  %v1142_v7 = vsel %vm1078_vm11, %v2541_v53, %v1110_v61  ;;  %v1851_v8 = vpop.f32.mrb[29].mxu1  ;;  %v997_v44 = vmul.f32 %v2473_v17, %v2473_v17 }
 0x189   : > { %v1682_v4 = vpack.c.bf16 %v1126_v1, %v1125_v63  ;;  %v1804_v5 = vadd.f32 %v1803_v2, %v1802_v59  ;;  %v1805_v6 = vpop.f32.mrb[30].mxu0  ;;  %v1722_v12 = vpack.c.bf16 %v1142_v7, %v1141_v60  ;;  %v2547_v13 = vadd.f32 %v1851_v8, %v1850_v3  ;;  %v1853_v14 = vpop.f32.mrb[30].mxu1 }
 0x18a   : > { %v1806_v10 = vpop.f32.mrb[31].mxu0  ;;  %v1854_v18 = vpop.f32.mrb[31].mxu1 }
 0x18b   : > { %1734 = vst [vmem:[%s2475_s25 + $0x30] sm:$0xff] %v1682_v4   ;;  %v954_v15 = vadd.f32 %v1804_v5, %v953_v56  ;;  %v993_v16 = vmul.f32 %v1804_v5, %v1804_v5  ;;  %v1095_v19 = vmul.f32 0.2, %v1804_v5  ;;  %v1807_v22 = vadd.f32 %v1806_v10, %v1805_v6  ;;  %1742 = vst [vmem:[%s2475_s25 + $0x70] sm:$0xff] %v1722_v12  }
 0x18c   : > { %vm1079_vm12 = vcmp.gt.f32.partialorder %v2547_v13, 0.0  ;;  %v1111_v23 = vmul.f32 0.2, %v2547_v13  ;;  %vm1063_vm13 = vcmp.gt.f32.partialorder %v1804_v5, 0.0  ;;  %v2553_v25 = vadd.f32 %v1854_v18, %v1853_v14 }
 0x18d   : > { %v1024_v24 = vadd.f32 %v1023_v0, %v993_v16  ;;  %v955_v27 = vadd.f32 %v1807_v22, %v954_v15  ;;  %v994_v28 = vmul.f32 %v1807_v22, %v1807_v22  ;;  %vm1064_vm14 = vcmp.gt.f32.partialorder %v1807_v22, 0.0 }
 0x18e   : > { %v1096_v29 = vmul.f32 0.2, %v1807_v22  ;;  %v1143_v31 = vsel %vm1079_vm12, %v2547_v13, %v1111_v23  ;;  %vm1080_vm15 = vcmp.gt.f32.partialorder %v2553_v25, 0.0  ;;  %v1112_v32 = vmul.f32 0.2, %v2553_v25 }
 0x18f   : > { %v1127_v33 = vsel %vm1063_vm13, %v1804_v5, %v1095_v19  ;;  %v956_v34 = vadd.f32 %v2462_v55, %v955_v27  ;;  %v1025_v35 = vadd.f32 %v1024_v24, %v994_v28 }
 0x190   : > { %v1128_v36 = vsel %vm1064_vm14, %v1807_v22, %v1096_v29  ;;  %v1144_v38 = vsel %vm1080_vm15, %v2553_v25, %v1112_v32 }
 0x191   : > { %v1687_v37 = vpack.c.bf16 %v1128_v36, %v1127_v33  ;;  %v957_v55 = vadd.f32 %v2466_v62, %v956_v34  ;;  %v1026_v40 = vadd.f32 %v1025_v35, %v995_v30  ;;  %v1727_v43 = vpack.c.bf16 %v1144_v38, %v1143_v31 }
 0x193   : > { %1735 = vst [vmem:[%s2475_s25 + $0x38] sm:$0xff] %v1687_v37   ;;  %v958_v46 = vadd.f32 %v2473_v17, %v957_v55  ;;  %v1027_v47 = vadd.f32 %v1026_v40, %v996_v39  ;;  %1743 = vst [vmem:[%s2475_s25 + $0x78] sm:$0xff] %v1727_v43  }
 0x194   : > { %2096 = shalt.err (!%p2093_p9)
}
 0x195   : > { %s2097_s13 = scalar_lea.hbm %s2567_s7, 2048  ;;  %s2101_s12 = scalar_lea.hbm %s2736_s2, 131072 }
 0x196   : > { %p2098_p1 = scmp.ne.s32.totalorder %s2567_s7, %s2097_s13  ;;  %p2102_p7 = scmp.lt.u32.totalorder %s2567_s7, %s2736_s2 }
 0x197   : > { %p2103_p13 = scmp.lt.u32.totalorder %s2101_s12, %s2097_s13  ;;  %p2105_p6 = scmp.lt.u32.totalorder %s2097_s13, %s2567_s7 }
 0x198   : > { %p2099_p2 = pnand %p2098_p1, %p2360_p11 }
 0x199   : > { %p2104_p4 = por %p2103_p13, %p2102_p7 }
 0x19a   : > { %p2100_p3 = pneg %p2099_p2 }
 0x19b   : > { %p2106_p8 = por %p2105_p6, %p2104_p4 }
 0x19d   : > { %p2107_p12 = pnand %p2106_p8, %p2100_p3 }
 0x19f   : > { %2110 = shalt.err (!%p2107_p12)
}
 0x1a0   : > { %s2238_s28 = smov 64   ;;  %s2239_s5 = smov 4   ;;  %v998_v62 = vmul.f32 %v2481_v26, %v2481_v26  ;;  %v959_v17 = vadd.f32 %v2481_v26, %v958_v46  ;;  %v1028_v48 = vadd.f32 %v1027_v47, %v997_v44  ;;  %v999_v49 = vmul.f32 %v2487_v45, %v2487_v45 }
 0x1a1   : > { %1878 = dma.vmem_to_hbm [thread:$0]  (%p2360_p11), %s2569_s14, 2048, %s2567_s7, %s1306_s9, %s2238_s28, %s2238_s28, %s2239_s5   ;;  %v1000_v56 = vmul.f32 %v2493_v54, %v2493_v54  ;;  %v1001_v59 = vmul.f32 %v2499_v11, %v2499_v11  ;;  %v1002_v26 = vmul.f32 %v2505_v21, %v2505_v21  ;;  %v1003_v1 = vmul.f32 %v2511_v41, %v2511_v41 }
 0x1a2   : > { %v1029_v50 = vadd.f32 %v1028_v48, %v998_v62  ;;  %v960_v52 = vadd.f32 %v2487_v45, %v959_v17  ;;  %v1004_v4 = vmul.f32 %v2517_v51, %v2517_v51  ;;  %v1005_v6 = vmul.f32 %v2523_v9, %v2523_v9  ;;  %s1310_s14 = sand.u32 1, %s2298_s21   ;;  %s1610_s7 = sshll.u32 %s2221_s18, 4 }
 0x1a3   : > { %v1006_v8 = vmul.f32 %v2529_v20, %v2529_v20  ;;  %v1007_v12 = vmul.f32 %v2535_v42, %v2535_v42  ;;  %v1008_v15 = vmul.f32 %v2541_v53, %v2541_v53  ;;  %s281_s9 = scalar_lea.vmem [#allocation9], %s2416_s10  ;;  %s287_s27 = scalar_lea.vmem [#allocation11], %s2416_s10 }
 0x1a4   : > { %v961_v57 = vadd.f32 %v2493_v54, %v960_v52  ;;  %v1030_v58 = vadd.f32 %v1029_v50, %v999_v49  ;;  %s1345_s11 = sshll.u32 %s281_s9, 4  ;;  %s1359_s13 = sshll.u32 %s287_s27, 4  ;;  %s2653_s11 = int_to_ptr.vmem [resolvable:$true] %s1345_s11  ;;  %s2660_s13 = int_to_ptr.vmem [resolvable:$true] %s1359_s13 }
 0x1a5   : > { %s2651_s12 = scalar_lea.hbm %s2737_s3, %s1610_s7  ;;  %s2658_s26 = scalar_lea.hbm %s2738_s4, %s1610_s7 }
 0x1a6   : > { %v962_v60 = vadd.f32 %v2499_v11, %v961_v57  ;;  %v1031_v61 = vadd.f32 %v1030_v58, %v1000_v56  ;;  %s2662_s30 = scalar_lea.sflag [#allocation10], %s1310_s14  ;;  %s2111_s28 = scalar_lea.vmem %s2653_s11, 16 }
 0x1a7   : > { %p2112_p10 = scmp.ne.s32.totalorder %s2653_s11, %s2111_s28  ;;  %s2240_s5 = smov [#allocation9]  }
 0x1a8   : > { %v963_v63 = vadd.f32 %v2505_v21, %v962_v60  ;;  %v1032_v0 = vadd.f32 %v1031_v61, %v1001_v59  ;;  %s2115_s23 = sshll.u32 %s2240_s5, 4  ;;  %s2116_s23 = int_to_ptr.vmem [resolvable:$false] %s2115_s23 }
 0x1a9   : > { %p2113_p0 = pnand %p2112_p10, %p2360_p11  ;;  %s2117_s25 = scalar_lea.vmem %s2116_s23, 32 }
 0x1aa   : > { %v964_v45 = vadd.f32 %v2511_v41, %v963_v63  ;;  %v1033_v2 = vadd.f32 %v1032_v0, %v1002_v26  ;;  %p2118_p9 = scmp.lt.s32.totalorder %s2653_s11, %s2116_s23  ;;  %p2119_p1 = scmp.lt.s32.totalorder %s2117_s25, %s2111_s28 }
 0x1ab   : > { %p2114_p5 = pneg %p2113_p0 }
 0x1ac   : > { %v1034_v54 = vadd.f32 %v1033_v2, %v1003_v1  ;;  %v965_v3 = vadd.f32 %v2517_v51, %v964_v45  ;;  %p2120_p2 = por %p2119_p1, %p2118_p9 }
 0x1ae   : > { %v1035_v11 = vadd.f32 %v1034_v54, %v1004_v4  ;;  %v966_v5 = vadd.f32 %v2523_v9, %v965_v3  ;;  %v1009_v9 = vmul.f32 %v2547_v13, %v2547_v13  ;;  %p2121_p3 = pnand %p2120_p2, %p2114_p5 }
 0x1b0   : > { %v1036_v21 = vadd.f32 %v1035_v11, %v1005_v6  ;;  %v967_v7 = vadd.f32 %v2529_v20, %v966_v5 }
 0x1b2   : > { %v1037_v41 = vadd.f32 %v1036_v21, %v1006_v8  ;;  %v968_v10 = vadd.f32 %v2535_v42, %v967_v7  ;;  %v1010_v42 = vmul.f32 %v2553_v25, %v2553_v25 }
 0x1b4   : > { %v1038_v14 = vadd.f32 %v1037_v41, %v1007_v12  ;;  %v969_v51 = vadd.f32 %v2541_v53, %v968_v10 }
 0x1b6   : > { %v1039_v16 = vadd.f32 %v1038_v14, %v1008_v15  ;;  %v970_v20 = vadd.f32 %v2547_v13, %v969_v51 }
 0x1b8   : > { %v1040_v18 = vadd.f32 %v1039_v16, %v1009_v9  ;;  %v971_v19 = vadd.f32 %v2553_v25, %v970_v20 }
 0x1ba   : > { %v972_v22 = vrot.slane %v971_v19, 4  ;;  %v1041_v23 = vadd.f32 %v1040_v18, %v1010_v42 }
 0x1bc   : > { %v1042_v24 = vrot.slane %v1041_v23, 4  ;;  %v973_v53 = vadd.f32 %v972_v22, %v971_v19 }
 0x1be   : > { %v974_v27 = vrot.slane %v973_v53, 2  ;;  %v1043_v28 = vadd.f32 %v1042_v24, %v1041_v23 }
 0x1c0   : > { %v975_v29 = vadd.f32 %v974_v27, %v973_v53  ;;  %v1044_v30 = vrot.slane %v1043_v28, 2 }
 0x1c2   : > { %v976_v13 = vrot.slane %v975_v29, 1  ;;  %v1045_v31 = vadd.f32 %v1044_v30, %v1043_v28 }
 0x1c4   : > { %v977_v25 = vadd.f32 %v976_v13, %v975_v29  ;;  %v1046_v32 = vrot.slane %v1045_v31, 1 }
 0x1c6   : > { %978 = vst [vmem:[%s281_s9] sm:$0x1] %v977_v25  ;;  %v1047_v33 = vadd.f32 %v1046_v32, %v1045_v31 }
 0x1c7   : > { %2124 = shalt.err (!%p2121_p3)
}
 0x1c8   : > { %s2125_s14 = scalar_lea.hbm %s2651_s12, 16  ;;  %s2129_s18 = scalar_lea.hbm %s2737_s3, 1024 }
 0x1c9   : > { %p2126_p7 = scmp.ne.s32.totalorder %s2651_s12, %s2125_s14  ;;  %p2130_p6 = scmp.lt.u32.totalorder %s2651_s12, %s2737_s3 }
 0x1ca   : > { %p2131_p8 = scmp.lt.u32.totalorder %s2129_s18, %s2125_s14  ;;  %p2133_p10 = scmp.lt.u32.totalorder %s2125_s14, %s2651_s12 }
 0x1cb   : > { %p2127_p13 = pnand %p2126_p7, %p2360_p11 }
 0x1cc   : > { %p2132_p12 = por %p2131_p8, %p2130_p6 }
 0x1cd   : > { %p2128_p4 = pneg %p2127_p13 }
 0x1ce   : > { %p2134_p0 = por %p2133_p10, %p2132_p12 }
 0x1d0   : > { %p2135_p5 = pnand %p2134_p0, %p2128_p4 }
 0x1d2   : > { %2138 = shalt.err (!%p2135_p5)
}
 0x1d3   : > { %1879 = dma.vmem_to_hbm [thread:$0]  (%p2360_p11), %s2653_s11, 16, %s2651_s12, %s2662_s30   ;;  %1048 = vst [vmem:[%s287_s27] sm:$0x1] %v1047_v33 }
 0x1d4   : > { %s2139_s28 = scalar_lea.vmem %s2660_s13, 16  ;;  %s2241_s23 = smov [#allocation11]  }
 0x1d5   : > { %p2140_p9 = scmp.ne.s32.totalorder %s2660_s13, %s2139_s28  ;;  %s2143_s25 = sshll.u32 %s2241_s23, 4  ;;  %s2144_s25 = int_to_ptr.vmem [resolvable:$false] %s2143_s25 }
 0x1d6   : > { %s2145_s14 = scalar_lea.vmem %s2144_s25, 32  ;;  %p2146_p3 = scmp.lt.s32.totalorder %s2660_s13, %s2144_s25 }
 0x1d7   : > { %p2141_p1 = pnand %p2140_p9, %p2360_p11  ;;  %p2147_p7 = scmp.lt.s32.totalorder %s2145_s14, %s2139_s28 }
 0x1d9   : > { %p2142_p2 = pneg %p2141_p1  ;;  %p2148_p13 = por %p2147_p7, %p2146_p3 }
 0x1db   : > { %p2149_p4 = pnand %p2148_p13, %p2142_p2 }
 0x1dd   : > { %2152 = shalt.err (!%p2149_p4)
}
 0x1de   : > { %s2153_s10 = scalar_lea.hbm %s2658_s26, 16  ;;  %s2157_s12 = scalar_lea.hbm %s2738_s4, 1024 }
 0x1df   : > { %p2154_p6 = scmp.ne.s32.totalorder %s2658_s26, %s2153_s10  ;;  %p2158_p10 = scmp.lt.u32.totalorder %s2658_s26, %s2738_s4 }
 0x1e0   : > { %p2159_p0 = scmp.lt.u32.totalorder %s2157_s12, %s2153_s10  ;;  %p2161_p9 = scmp.lt.u32.totalorder %s2153_s10, %s2658_s26 }
 0x1e1   : > { %p2155_p8 = pnand %p2154_p6, %p2360_p11 }
 0x1e2   : > { %p2160_p5 = por %p2159_p0, %p2158_p10 }
 0x1e3   : > { %p2156_p12 = pneg %p2155_p8 }
 0x1e4   : > { %p2162_p1 = por %p2161_p9, %p2160_p5 }
 0x1e6   : > { %p2163_p2 = pnand %p2162_p1, %p2156_p12 }
 0x1e8   : > { %2166 = shalt.err (!%p2163_p2)
}
 0x1e9   : > { %1880 = dma.vmem_to_hbm [thread:$0]  (%p2360_p11), %s2660_s13, 16, %s2658_s26, %s2662_s30  }
 0x1ea PF: > { %p1905_p3 = scmp.ge.s32.totalorder %s2229_s20, 2  ;;  %s1371_s18 = sand.u32 1, %s2209_s15  }
 0x1eb   : > { %p2754_p7 = scmp.ne.s32.totalorder %s2743_s24, 0  ;;  %s1372_s21 = scalar_lea.sflag [#allocation5], %s1371_s18 }
 0x1ed   : > { %p1893_p13 = pnand %p1905_p3, %p2754_p7 }
 0x1ef   : > { %2200 = dma.done.wait (!%p1893_p13), %s1372_s21, 2048  }
 0x1f0   : > { %2202 = vsyncadd (!%p1893_p13), %s1372_s21, 4294965248  ;;  %s1380_s5 = sand.u32 1, %s1515_s22  }
 0x1f1   : > { %s1381_s28 = scalar_lea.sflag [#allocation10], %s1380_s5 }
 0x1f2   : > { %2204 = dma.done.wait (!%p1893_p13), %s1381_s28, 32  }
 0x1f3   : > { %2206 = vsyncadd (!%p1893_p13), %s1381_s28, 4294967264  ;;  %s25_s20 = sadd.s32 1, %s2229_s20   ;;  %s2755_s15 = smov %s2213_s16 }
 0x1f4   : > { %p22_p11 = scmp.ge.s32.totalorder %s25_s20, 66   ;;  %s2756_s16 = smov %s2217_s17 }
 0x1f5   : > { %s2757_s17 = smov %s2369_s8  ;;  %s2758_s18 = smov %s2225_s19 }
 0x1f6   : > { %s2759_s19 = smov %s2761_s29  ;;  %24 = sbr.rel (!%p22_p11) target bundleno = 9 (0x9), region = 118 }
 0x1fd   :  { %1393 = vsyncpa [#allocation4], 1 }
 0x1fe   :  { %1395 = vsyncpa [#allocation4 + $0x1], 1 }
 0x1ff   :  { %1396 = vsyncpa [#allocation7], 1 }
 0x200   :  { %1397 = vsyncpa [#allocation5], 1 }
 0x201   :  { %1399 = vsyncpa [#allocation5 + $0x1], 1 }
 0x202   :  { %1400 = vsyncpa [#allocation10], 1 }
 0x203   :  { %1402 = vsyncpa [#allocation10 + $0x1], 1 }

</bundles_post_ra>
